<compile_context>
chip_gen: v7x
topology: tpu7x:2x2x1
jax: 0.10.0
libtpu: 0.0.40
codegen_flags: <defaults>
</compile_context>

<pallas_src>
import math

import jax
import jax.numpy as jnp
from jax.experimental import pallas as pl
from jax.experimental.pallas import tpu as pltpu


def _round_up(x, m):
    return ((x + m - 1) // m) * m


def esums_kernel(beta_ref, adj_ref, attr_k_ref, attr_m_ref, w_ref, b_ref,
                 out_ref, acc_ref):
    k = pl.program_id(1)

    # Fold the (1 + beta) * edge_attr residual into the accumulator init so the
    # epilogue never touches attr_m.
    @pl.when(k == 0)
    def _():
        acc_ref[...] = (1.0 + beta_ref[0, 0]) * attr_m_ref[...]

    # Sum_Agg partial: (TM, TK) x (TK, C_in) on the MXU in its native dtype
    # (bf16 x bf16 by default, f32 x f32 in exact mode); accumulation is f32.
    acc_ref[...] += jnp.dot(adj_ref[...], attr_k_ref[...],
                            preferred_element_type=jnp.float32)

    # EdgeEmbedding_15 epilogue: linear + bias + ReLU, once per M stripe.
    @pl.when(k == pl.num_programs(1) - 1)
    def _():
        y = jnp.dot(acc_ref[...], w_ref[...],
                    preferred_element_type=jnp.float32) + b_ref[...]
        out_ref[...] = jnp.maximum(y, 0.0).astype(out_ref.dtype)


def _vmem_budget_bytes():
    # v5e/v6e: 128 MiB physical -> ~100 MiB usable; v7x: 64 MiB -> ~48 MiB cap.
    cap = 64 * 1024 * 1024
    try:
        info = pltpu.get_tpu_info()
        cap = int(getattr(info, "vmem_capacity_bytes", cap))
    except Exception:
        pass
    return max(min(int(0.8 * cap), cap - 16 * 1024 * 1024), 16 * 1024 * 1024)


def esums_forward(edge_attr, edge_adj, weight, bias, beta, *,
                  block_m=2048, block_k=1024, agg_dtype=jnp.bfloat16):
    """ESumS forward.

    edge_attr: (E, C_in) f32
    edge_adj : (E, E)    f32 binary line-graph adjacency
    weight   : (C_out, C_in) f32 (torch.nn.Linear layout)
    bias     : (C_out,)  f32
    beta     : (1, 1)    f32
    agg_dtype: dtype of the adjacency stream and of edge_attr *inside the
               aggregation matmul only*.  bf16 (default) halves the dominant
               HBM stream and is exact for a 0/1 adjacency; jnp.float32 gives
               the exact reference path (use it for weighted adjacencies).
    """
    E, C_in = edge_attr.shape
    C_out = weight.shape[0]
    agg_dtype = jnp.dtype(agg_dtype)
    agg_bytes = agg_dtype.itemsize

    C_in_p = _round_up(C_in, 128)
    C_out_p = _round_up(C_out, 128)
    E_128 = _round_up(E, 128)

    # ---- tile selection -----------------------------------------------------
    tile_m = max(128, min(_round_up(block_m, 128), E_128))
    tile_k = max(128, min(_round_up(block_k, 128), E_128))

    def est_bytes(tm, tk):
        return (2 * tm * tk * agg_bytes        # adj tile, double-buffered
                + 2 * tk * C_in_p * agg_bytes  # attr K stream
                + 2 * tm * C_in_p * 4          # attr residual (f32)
                + 2 * C_in_p * C_out_p * 4     # W^T (resident)
                + 2 * 8 * C_out_p * 4          # bias
                + 2 * tm * C_out_p * 4         # output tile
                + tm * C_in_p * 4)             # f32 accumulator scratch

    budget = _vmem_budget_bytes()
    while est_bytes(tile_m, tile_k) > budget and tile_m > 128:
        tile_m = max(128, _round_up(tile_m // 2, 128))
    while est_bytes(tile_m, tile_k) > budget and tile_k > 128:
        tile_k = max(128, _round_up(tile_k // 2, 128))

    # Keep tiles nested so one padded E works for both grid axes.
    if tile_m % tile_k != 0 and tile_k % tile_m != 0:
        tile_k = math.gcd(tile_m, tile_k)  # both are multiples of 128

    E_p = _round_up(E, max(tile_m, tile_k))

    # Even number of M stripes keeps both TensorCores busy on the "parallel"
    # axis (v7x megacore); harmless on single-TC chips.
    if (E_p // tile_m) > 1 and (E_p // tile_m) % 2 == 1 and tile_m % 256 == 0:
        tile_m //= 2

    grid = (E_p // tile_m, E_p // tile_k)

    # ---- operand preparation (padding is mathematically exact) --------------
    attr_f32 = jnp.pad(edge_attr.astype(jnp.float32),
                       ((0, E_p - E), (0, C_in_p - C_in)))
    attr_k = attr_f32 if agg_dtype == jnp.float32 else attr_f32.astype(agg_dtype)
    adj_p = jnp.pad(edge_adj, ((0, E_p - E), (0, E_p - E))).astype(agg_dtype)
    w_t_p = jnp.pad(weight.T.astype(jnp.float32),
                    ((0, C_in_p - C_in), (0, C_out_p - C_out)))
    b_p = jnp.pad(bias.astype(jnp.float32), (0, C_out_p - C_out)).reshape(1, C_out_p)
    beta = jnp.asarray(beta, jnp.float32).reshape(1, 1)

    est = est_bytes(tile_m, tile_k)
    vmem_limit = int(min(max(2 * est, 16 * 1024 * 1024), budget))
    vmem_limit = max(vmem_limit, est + est // 4)

    out_p = pl.pallas_call(
        esums_kernel,
        out_shape=jax.ShapeDtypeStruct((E_p, C_out_p), jnp.float32),
        grid_spec=pltpu.PrefetchScalarGridSpec(
            num_scalar_prefetch=0,
            grid=grid,
            in_specs=[
                pl.BlockSpec(memory_space=pltpu.SMEM),                    # beta (1,1)
                pl.BlockSpec((tile_m, tile_k), lambda i, k: (i, k)),      # adj tile
                pl.BlockSpec((tile_k, C_in_p), lambda i, k: (k, 0)),      # attr (K rows)
                pl.BlockSpec((tile_m, C_in_p), lambda i, k: (i, 0)),      # attr (residual rows)
                pl.BlockSpec((C_in_p, C_out_p), lambda i, k: (0, 0)),     # W^T (small, resident)
                pl.BlockSpec((1, C_out_p), lambda i, k: (0, 0)),          # bias
            ],
            out_specs=pl.BlockSpec((tile_m, C_out_p), lambda i, k: (i, 0)),
            scratch_shapes=[pltpu.VMEM((tile_m, C_in_p), jnp.float32)],
        ),
        compiler_params=pltpu.CompilerParams(
            dimension_semantics=("parallel", "arbitrary"),
            vmem_limit_bytes=int(vmem_limit)),
    )(beta, adj_p, attr_k, attr_f32, w_t_p, b_p)

    return out_p[:E, :C_out]


def _reference(edge_attr, edge_adj, weight, bias, beta,
               agg_attr_dtype=jnp.float32):
    """f32 reference; agg_attr_dtype=bf16 mirrors the kernel's quantization."""
    hp = jax.lax.Precision.HIGHEST
    attr_for_agg = edge_attr.astype(agg_attr_dtype).astype(jnp.float32)
    agg = jnp.dot(edge_adj, attr_for_agg, precision=hp)
    x = agg + (1.0 + beta[0, 0]) * edge_attr
    y = jnp.dot(x, weight.T, precision=hp) + bias[None, :]
    return jnp.maximum(y, 0.0)


def _make_inputs(key, E, C_in, C_out):
    k_attr, k_adj, k_w, k_b, k_beta = jax.random.split(key, 5)
    edge_attr = jax.random.normal(k_attr, (E, C_in), dtype=jnp.float32)
    # Binary line-graph adjacency (exact in bf16).
    edge_adj = (jax.random.uniform(k_adj, (E, E)) < 0.3).astype(jnp.float32)
    w_bound = (6.0 / (C_in + C_out)) ** 0.5
    weight = jax.random.uniform(k_w, (C_out, C_in), minval=-w_bound,
                                maxval=w_bound, dtype=jnp.float32)
    bias = jax.random.uniform(k_b, (C_out,), minval=-w_bound,
                              maxval=w_bound, dtype=jnp.float32)
    beta_bound = (6.0 / 2.0) ** 0.5
    beta = jax.random.uniform(k_beta, (1, 1), minval=-beta_bound,
                              maxval=beta_bound, dtype=jnp.float32)
    return edge_attr, edge_adj, weight, bias, beta


if __name__ == "__main__":
    # Case 1: small shapes implied by the module (single tile after clamping).
    E, C_in, C_out = 16, 32, 32
    edge_attr, edge_adj, weight, bias, beta = _make_inputs(
        jax.random.PRNGKey(0), E, C_in, C_out)

    out = jax.block_until_ready(
        esums_forward(edge_attr, edge_adj, weight, bias, beta))
    assert out.shape == (E, C_out)
    ref_q = _reference(edge_attr, edge_adj, weight, bias, beta,
                       agg_attr_dtype=jnp.bfloat16)
    ref = _reference(edge_attr, edge_adj, weight, bias, beta)
    assert jnp.allclose(out, ref_q, atol=2e-3, rtol=2e-3)   # kernel mechanics
    assert jnp.allclose(out, ref, atol=1e-1, rtol=2e-2)     # module semantics (bf16 agg)

    out_f32 = jax.block_until_ready(
        esums_forward(edge_attr, edge_adj, weight, bias, beta,
                      agg_dtype=jnp.float32))
    assert jnp.allclose(out_f32, ref, atol=2e-3, rtol=2e-3)  # exact path

    # Case 2: multi-tile (2x2) grid — exercises the K accumulator, the residual
    # init at k==0 and the last-k epilogue, with the parallel M axis.
    E2 = 256
    ea2, adj2, w2, b2, beta2 = _make_inputs(jax.random.PRNGKey(1), E2, C_in, C_out)

    out2 = jax.block_until_ready(
        esums_forward(ea2, adj2, w2, b2, beta2, block_m=128, block_k=128))
    assert out2.shape == (E2, C_out)
    ref2_q = _reference(ea2, adj2, w2, b2, beta2, agg_attr_dtype=jnp.bfloat16)
    ref2 = _reference(ea2, adj2, w2, b2, beta2)
    assert jnp.allclose(out2, ref2_q, atol=2e-3, rtol=2e-3)
    assert jnp.allclose(out2, ref2, atol=1e-1, rtol=2e-2)

    out2_f32 = jax.block_until_ready(
        esums_forward(ea2, adj2, w2, b2, beta2, block_m=128, block_k=128,
                      agg_dtype=jnp.float32))
    assert jnp.allclose(out2_f32, ref2, atol=2e-3, rtol=2e-3)

    print("KERNEL_OK")
</pallas_src>

<mosaic_0001>
module attributes {stable_mosaic.version = 11 : i64} {
  func.func @esums_kernel(%arg0: i32, %arg1: i32, %arg2: memref<1x1xf32, #tpu.memory_space<smem>>, %arg3: memref<128x128xbf16, #tpu.memory_space<vmem>>, %arg4: memref<128x128xbf16, #tpu.memory_space<vmem>>, %arg5: memref<128x128xf32, #tpu.memory_space<vmem>>, %arg6: memref<128x128xf32, #tpu.memory_space<vmem>>, %arg7: memref<1x128xf32, #tpu.memory_space<vmem>>, %arg8: memref<128x128xf32, #tpu.memory_space<vmem>>, %arg9: memref<128x128xf32, #tpu.memory_space<vmem>>) attributes {dimension_semantics = [#tpu.dimension_semantics<parallel>, #tpu.dimension_semantics<arbitrary>], iteration_bounds = array<i64: 1, 1>, scalar_prefetch = 0 : i64, scratch_operands = 1 : i64, tpu.core_type = #tpu.core_type<tc>, window_params = [{transform_indices = @transform_0, window_bounds = array<i64: 1, 1>}, {transform_indices = @transform_1, window_bounds = array<i64: 128, 128>}, {transform_indices = @transform_2, window_bounds = array<i64: 128, 128>}, {transform_indices = @transform_3, window_bounds = array<i64: 128, 128>}, {pipeline_mode = #tpu.pipeline_mode<synchronous>, transform_indices = @transform_4, window_bounds = array<i64: 128, 128>}, {pipeline_mode = #tpu.pipeline_mode<synchronous>, transform_indices = @transform_5, window_bounds = array<i64: 1, 128>}, {transform_indices = @transform_6, window_bounds = array<i64: 128, 128>}]} {
    %c0_i32 = arith.constant 0 : i32
    %0 = arith.cmpi eq, %arg1, %c0_i32 : i32
    %1 = arith.extui %0 : i1 to i32
    %c0_i32_0 = arith.constant 0 : i32
    %2 = arith.cmpi ne, %1, %c0_i32_0 : i32
    scf.if %2 {
      %c0_10 = arith.constant 0 : index
      %c0_11 = arith.constant 0 : index
      %12 = memref.load %arg2[%c0_10, %c0_11] : memref<1x1xf32, #tpu.memory_space<smem>>
      %cst_12 = arith.constant 1.000000e+00 : f32
      %13 = arith.addf %cst_12, %12 : f32
      %c0_13 = arith.constant 0 : index
      %c0_14 = arith.constant 0 : index
      %14 = vector.load %arg5[%c0_13, %c0_14] : memref<128x128xf32, #tpu.memory_space<vmem>>, vector<128x128xf32>
      %15 = vector.broadcast %13 : f32 to vector<128x128xf32>
      %16 = arith.mulf %15, %14 : vector<128x128xf32>
      %c0_15 = arith.constant 0 : index
      %c0_16 = arith.constant 0 : index
      %17 = vector.load %arg9[%c0_15, %c0_16] : memref<128x128xf32, #tpu.memory_space<vmem>>, vector<128x128xf32>
      tpu.vector_store %arg9[%c0_15, %c0_16], %16 {strides = array<i32>} : memref<128x128xf32, #tpu.memory_space<vmem>>, vector<128x128xf32>,
    } else {
    }
    %c0 = arith.constant 0 : index
    %c0_1 = arith.constant 0 : index
    %3 = vector.load %arg9[%c0, %c0_1] : memref<128x128xf32, #tpu.memory_space<vmem>>, vector<128x128xf32>
    %c0_2 = arith.constant 0 : index
    %c0_3 = arith.constant 0 : index
    %4 = vector.load %arg3[%c0_2, %c0_3] : memref<128x128xbf16, #tpu.memory_space<vmem>>, vector<128x128xbf16>
    %c0_4 = arith.constant 0 : index
    %c0_5 = arith.constant 0 : index
    %5 = vector.load %arg4[%c0_4, %c0_5] : memref<128x128xbf16, #tpu.memory_space<vmem>>, vector<128x128xbf16>
    %cst = arith.constant dense<0.000000e+00> : vector<128x128xf32>
    %6 = tpu.matmul %4, %5, %cst {dimension_numbers = #tpu.dot_dimension_numbers<[1], [0], [0], [1], [0, 0, 1, 1], [], []>} : vector<128x128xbf16>, vector<128x128xbf16>, vector<128x128xf32> -> vector<128x128xf32>
    %7 = arith.addf %3, %6 : vector<128x128xf32>
    %c0_6 = arith.constant 0 : index
    %c0_7 = arith.constant 0 : index
    %8 = vector.load %arg9[%c0_6, %c0_7] : memref<128x128xf32, #tpu.memory_space<vmem>>, vector<128x128xf32>
    tpu.vector_store %arg9[%c0_6, %c0_7], %7 {strides = array<i32>} : memref<128x128xf32, #tpu.memory_space<vmem>>, vector<128x128xf32>,
    %c0_i32_8 = arith.constant 0 : i32
    %9 = arith.cmpi eq, %arg1, %c0_i32_8 : i32
    %10 = arith.extui %9 : i1 to i32
    %c0_i32_9 = arith.constant 0 : i32
    %11 = arith.cmpi ne, %10, %c0_i32_9 : i32
    scf.if %11 {
      %c0_10 = arith.constant 0 : index
      %c0_11 = arith.constant 0 : index
      %12 = vector.load %arg9[%c0_10, %c0_11] : memref<128x128xf32, #tpu.memory_space<vmem>>, vector<128x128xf32>
      %c0_12 = arith.constant 0 : index
      %c0_13 = arith.constant 0 : index
      %13 = vector.load %arg6[%c0_12, %c0_13] : memref<128x128xf32, #tpu.memory_space<vmem>>, vector<128x128xf32>
      %cst_14 = arith.constant dense<0.000000e+00> : vector<128x128xf32>
      %14 = tpu.matmul %12, %13, %cst_14 {dimension_numbers = #tpu.dot_dimension_numbers<[1], [0], [0], [1], [0, 0, 1, 1], [], []>} : vector<128x128xf32>, vector<128x128xf32>, vector<128x128xf32> -> vector<128x128xf32>
      %c0_15 = arith.constant 0 : index
      %c0_16 = arith.constant 0 : index
      %15 = vector.load %arg7[%c0_15, %c0_16] : memref<1x128xf32, #tpu.memory_space<vmem>>, vector<1x128xf32>
      %16 = vector.broadcast %15 : vector<1x128xf32> to vector<128x128xf32>
      %17 = arith.addf %14, %16 : vector<128x128xf32>
      %cst_17 = arith.constant 0.000000e+00 : f32
      %18 = vector.broadcast %cst_17 : f32 to vector<128x128xf32>
      %19 = arith.maximumf %17, %18 : vector<128x128xf32>
      %c0_18 = arith.constant 0 : index
      %c0_19 = arith.constant 0 : index
      %20 = vector.load %arg8[%c0_18, %c0_19] : memref<128x128xf32, #tpu.memory_space<vmem>>, vector<128x128xf32>
      tpu.vector_store %arg8[%c0_18, %c0_19], %19 {strides = array<i32>} : memref<128x128xf32, #tpu.memory_space<vmem>>, vector<128x128xf32>,
    } else {
    }
    return
  }
  func.func @transform_0(%arg0: i32, %arg1: i32) -> (i32, i32) {
    %c0_i32 = arith.constant 0 : i32
    %c0_i32_0 = arith.constant 0 : i32
    %c0_i32_1 = arith.constant 0 : i32
    return %c0_i32, %c0_i32_0 : i32, i32
  }
  func.func @transform_1(%arg0: i32, %arg1: i32) -> (i32, i32) {
    %c0_i32 = arith.constant 0 : i32
    return %arg0, %arg1 : i32, i32
  }
  func.func @transform_2(%arg0: i32, %arg1: i32) -> (i32, i32) {
    %c0_i32 = arith.constant 0 : i32
    %c0_i32_0 = arith.constant 0 : i32
    return %arg1, %c0_i32 : i32, i32
  }
  func.func @transform_3(%arg0: i32, %arg1: i32) -> (i32, i32) {
    %c0_i32 = arith.constant 0 : i32
    %c0_i32_0 = arith.constant 0 : i32
    return %arg0, %c0_i32 : i32, i32
  }
  func.func @transform_4(%arg0: i32, %arg1: i32) -> (i32, i32) {
    %c0_i32 = arith.constant 0 : i32
    %c0_i32_0 = arith.constant 0 : i32
    %c0_i32_1 = arith.constant 0 : i32
    return %c0_i32, %c0_i32_0 : i32, i32
  }
  func.func @transform_5(%arg0: i32, %arg1: i32) -> (i32, i32) {
    %c0_i32 = arith.constant 0 : i32
    %c0_i32_0 = arith.constant 0 : i32
    %c0_i32_1 = arith.constant 0 : i32
    return %c0_i32, %c0_i32_0 : i32, i32
  }
  func.func @transform_6(%arg0: i32, %arg1: i32) -> (i32, i32) {
    %c0_i32 = arith.constant 0 : i32
    %c0_i32_0 = arith.constant 0 : i32
    return %arg0, %c0_i32 : i32, i32
  }
}

</mosaic_0001>

<bundles_post_ra>
// kernel: tpu_custom_call.1
= control target key start
LH: loop header
LB: loop body
LE: loop exit
PB: predicated region body
PF: predicated region fallthrough
CT: control target
= control target key end

     0   :  { %12 = vsyncpa [#allocation5], 0  ;;  %s1119_s0 = inlined_call_operand.<no memory space> [shape: f32[1,1], index: 0, kind: input, shape index: {}]   ;;  %s1120_s1 = inlined_call_operand.hbm [shape: bf16[128,128], index: 1, kind: input, shape index: {}]   ;;  %s1121_s2 = inlined_call_operand.hbm [shape: bf16[128,128], index: 2, kind: input, shape index: {}]   ;;  %s1122_s3 = inlined_call_operand.hbm [shape: f32[128,128], index: 3, kind: input, shape index: {}]   ;;  %s1123_s4 = inlined_call_operand.hbm [shape: f32[128,128], index: 4, kind: input, shape index: {}]   ;;  %s1124_s5 = inlined_call_operand.vmem [shape: f32[1,128], index: 5, kind: input, shape index: {}]   ;;  %s1125_s6 = inlined_call_operand.hbm [shape: f32[128,128], index: 6, kind: output, shape index: {}]  }
   0x1   :  { %13 = vsyncpa [#allocation8], 0 }
   0x2   :  { %14 = vsyncpa [#allocation11], 0 }
   0x3   :  { %15 = vsyncpa [#allocation6], 0  ;;  %s975_s21 = smov [#allocation7]   ;;  %s976_s23 = smov [#allocation4]  }
   0x4   :  { %s35_s22 = sshll.u32 %s975_s21, 4  ;;  %s23_s24 = sshll.u32 %s976_s23, 4  ;;  %s36_s22 = int_to_ptr.vmem [resolvable:$true] %s35_s22  ;;  %s1019_s24 = int_to_ptr.vmem [resolvable:$true] %s23_s24 }
   0x5   :  { %s857_s27 = scalar_lea.hbm %s1121_s2, 1024 }
   0x6   :  { %p858_p0 = scmp.ne.s32.totalorder %s1121_s2, %s857_s27  ;;  %p861_p1 = scmp.lt.u32.totalorder %s857_s27, %s1121_s2 }
   0x8   :  { %p863_p2 = pnand %p861_p1, %p858_p0 }
   0xa   :  { %866 = shalt.err (!%p863_p2)
}
   0xb   :  { %s867_s8 = scalar_lea.vmem %s36_s22, 1024  ;;  %p872_p4 = scmp.lt.s32.totalorder %s36_s22, %s36_s22 }
   0xc   :  { %p868_p3 = scmp.ne.s32.totalorder %s36_s22, %s867_s8  ;;  %p873_p5 = scmp.lt.s32.totalorder %s867_s8, %s867_s8 }
   0xe   :  { %p874_p6 = por %p873_p5, %p872_p4 }
  0x10   :  { %p875_p7 = pnand %p874_p6, %p868_p3 }
  0x12   :  { %878 = shalt.err (!%p875_p7)
}
  0x13   :  { %s977_s9 = smov 64   ;;  %s978_s10 = smov 4  }
  0x14   :  { %41 = dma.hbm_to_vmem [thread:$0]  %s1121_s2, 1024, %s36_s22, [#allocation8], %s977_s9, %s977_s9, %s978_s10  }
  0x15   :  { %s879_s15 = scalar_lea.hbm %s1120_s1, 1024 }
  0x16   :  { %p880_p8 = scmp.ne.s32.totalorder %s1120_s1, %s879_s15  ;;  %p883_p9 = scmp.lt.u32.totalorder %s879_s15, %s1120_s1 }
  0x18   :  { %p885_p10 = pnand %p883_p9, %p880_p8 }
  0x1a   :  { %888 = shalt.err (!%p885_p10)
}
  0x1b   :  { %s889_s20 = scalar_lea.vmem %s1019_s24, 1024  ;;  %p894_p12 = scmp.lt.s32.totalorder %s1019_s24, %s1019_s24 }
  0x1c   :  { %p890_p11 = scmp.ne.s32.totalorder %s1019_s24, %s889_s20  ;;  %p895_p13 = scmp.lt.s32.totalorder %s889_s20, %s889_s20 }
  0x1e   :  { %p896_p0 = por %p895_p13, %p894_p12 }
  0x20   :  { %p897_p1 = pnand %p896_p0, %p890_p11 }
  0x22   :  { %900 = shalt.err (!%p897_p1)
}
  0x23   :  { %29 = dma.hbm_to_vmem [thread:$0]  %s1120_s1, 1024, %s1019_s24, [#allocation5], %s977_s9, %s977_s9, %s978_s10  }
  0x24   :  { %s979_s22 = smov [#allocation9]   ;;  %s901_s27 = scalar_lea.hbm %s1122_s3, 2048 }
  0x25   :  { %s47_s23 = sshll.u32 %s979_s22, 4  ;;  %p902_p2 = scmp.ne.s32.totalorder %s1122_s3, %s901_s27  ;;  %s48_s23 = int_to_ptr.vmem [resolvable:$true] %s47_s23 }
  0x26   :  { %p905_p3 = scmp.lt.u32.totalorder %s901_s27, %s1122_s3 }
  0x28   :  { %p907_p4 = pnand %p905_p3, %p902_p2 }
  0x2a   :  { %910 = shalt.err (!%p907_p4)
}
  0x2b   :  { %s911_s8 = scalar_lea.vmem %s48_s23, 2048  ;;  %p916_p6 = scmp.lt.s32.totalorder %s48_s23, %s48_s23 }
  0x2c   :  { %p912_p5 = scmp.ne.s32.totalorder %s48_s23, %s911_s8  ;;  %p917_p7 = scmp.lt.s32.totalorder %s911_s8, %s911_s8 }
  0x2e   :  { %p918_p8 = por %p917_p7, %p916_p6 }
  0x30   :  { %p919_p9 = pnand %p918_p8, %p912_p5 }
  0x32   :  { %922 = shalt.err (!%p919_p9)
}
  0x33   :  { %s980_s1 = smov 128   ;;  %s981_s24 = smov 8  }
  0x34   :  { %53 = dma.hbm_to_vmem [thread:$0]  %s1122_s3, 2048, %s48_s23, [#allocation8], %s980_s1, %s980_s1, %s981_s24  }
  0x35   :  { %s982_s11 = smov [#allocation10]   ;;  %s923_s15 = scalar_lea.hbm %s1123_s4, 2048 }
  0x36   :  { %s59_s12 = sshll.u32 %s982_s11, 4  ;;  %p924_p10 = scmp.ne.s32.totalorder %s1123_s4, %s923_s15  ;;  %s60_s12 = int_to_ptr.vmem [resolvable:$true] %s59_s12 }
  0x37   :  { %p927_p11 = scmp.lt.u32.totalorder %s923_s15, %s1123_s4 }
  0x39   :  { %p929_p12 = pnand %p927_p11, %p924_p10 }
  0x3b   :  { %932 = shalt.err (!%p929_p12)
}
  0x3c   :  { %s933_s20 = scalar_lea.vmem %s60_s12, 2048  ;;  %p938_p0 = scmp.lt.s32.totalorder %s60_s12, %s60_s12 }
  0x3d   :  { %p934_p13 = scmp.ne.s32.totalorder %s60_s12, %s933_s20  ;;  %p939_p1 = scmp.lt.s32.totalorder %s933_s20, %s933_s20 }
  0x3f   :  { %p940_p2 = por %p939_p1, %p938_p0 }
  0x41   :  { %p941_p3 = pnand %p940_p2, %p934_p13 }
  0x43   :  { %944 = shalt.err (!%p941_p3)
}
  0x44   :  { %65 = dma.hbm_to_vmem [thread:$0]  %s1123_s4, 2048, %s60_s12, [#allocation11], %s980_s1, %s980_s1, %s981_s24  }
  0x45   :  { %967 = dma.done.wait [#allocation5], 1024  }
  0x46   :  { %968 = vsyncadd [#allocation5], 4294966272 }
  0x47   :  { %969 = dma.done.wait [#allocation8], 3072  }
  0x48   :  { %970 = vsyncadd [#allocation8], 4294964224 }
  0x49   :  { %971 = dma.done.wait [#allocation11], 2048  }
  0x4a   :  { %972 = vsyncadd [#allocation11], 4294965248  ;;  %v841_v0 = vld [vmem:[#allocation7] sm:$0xff]   ;;  %v842_v1 = vld [vmem:[#allocation7 + $0x8] sm:$0xff]   ;;  %s86_s22 = sadd.f32 1.0, %s1119_s0 }
  0x4b   :  { %712 = vmatprep.subr.bf16.mxu0 %v841_v0  ;;  %v843_v2 = vld [vmem:[#allocation7 + $0x10] sm:$0xff]   ;;  %v844_v3 = vld [vmem:[#allocation7 + $0x18] sm:$0xff]   ;;  %v849_v4 = vld [vmem:[#allocation4] sm:$0xff]  }
  0x4c   :  { %713 = vmatpush3.bf16.msra.mxu0 %v841_v0  ;;  %728 = vmatprep.mubr.bf16.mxu0 %v849_v4  ;;  %v845_v5 = vld [vmem:[#allocation7 + $0x20] sm:$0xff]   ;;  %v846_v6 = vld [vmem:[#allocation7 + $0x28] sm:$0xff]   ;;  %v430_v9 = vld [vmem:[#allocation10 + $0x10] sm:$0xff]  ;;  %v1083_v40 = vstv %s86_s22 }
  0x4d   :  { %714 = vmatprep.subr.bf16.mxu0 %v842_v1  ;;  %v428_v7 = vld [vmem:[#allocation10] sm:$0xff]  ;;  %v429_v8 = vld [vmem:[#allocation10 + $0x8] sm:$0xff]  ;;  %v431_v11 = vld [vmem:[#allocation10 + $0x18] sm:$0xff] }
  0x4e   :  { %v800_v10 = vpack.c.bf16 %v429_v8, %v428_v7  ;;  %v804_v12 = vpack.c.bf16 %v431_v11, %v430_v9  ;;  %v432_v13 = vld [vmem:[#allocation10 + $0x20] sm:$0xff]  ;;  %v433_v14 = vld [vmem:[#allocation10 + $0x28] sm:$0xff]  ;;  %v847_v15 = vld [vmem:[#allocation7 + $0x30] sm:$0xff]  }
  0x4f   :  { %v808_v16 = vpack.c.bf16 %v433_v14, %v432_v13  ;;  %v434_v17 = vld [vmem:[#allocation10 + $0x30] sm:$0xff]  ;;  %v435_v18 = vld [vmem:[#allocation10 + $0x38] sm:$0xff]  ;;  %v436_v21 = vld [vmem:[#allocation10 + $0x40] sm:$0xff] }
  0x50   :  { %715 = vmatpush3.bf16.msra.mxu0 %v842_v1  ;;  %801 = vmatprep.subr.bf16.mxu1 %v800_v10  ;;  %v848_v19 = vld [vmem:[#allocation7 + $0x38] sm:$0xff]   ;;  %v812_v20 = vpack.c.bf16 %v435_v18, %v434_v17  ;;  %v437_v22 = vld [vmem:[#allocation10 + $0x48] sm:$0xff]  ;;  %v438_v25 = vld [vmem:[#allocation10 + $0x50] sm:$0xff] }
  0x51   :  { %716 = vmatprep.subr.bf16.mxu0 %v843_v2  ;;  %803 = vmatpush3.bf16.msra.mxu1 %v800_v10  ;;  %v816_v23 = vpack.c.bf16 %v437_v22, %v436_v21  ;;  %v850_v24 = vld [vmem:[#allocation4 + $0x8] sm:$0xff]   ;;  %v439_v26 = vld [vmem:[#allocation10 + $0x58] sm:$0xff]  ;;  %v851_v27 = vld [vmem:[#allocation4 + $0x10] sm:$0xff]  }
  0x52   :  { %805 = vmatprep.subr.bf16.mxu1 %v804_v12  ;;  %v820_v28 = vpack.c.bf16 %v439_v26, %v438_v25  ;;  %v440_v29 = vld [vmem:[#allocation10 + $0x60] sm:$0xff]  ;;  %v441_v30 = vld [vmem:[#allocation10 + $0x68] sm:$0xff]  ;;  %v852_v32 = vld [vmem:[#allocation4 + $0x18] sm:$0xff]  }
  0x53   :  { %v824_v31 = vpack.c.bf16 %v441_v30, %v440_v29  ;;  %v853_v33 = vld [vmem:[#allocation4 + $0x20] sm:$0xff]   ;;  %v854_v34 = vld [vmem:[#allocation4 + $0x28] sm:$0xff]   ;;  %v855_v35 = vld [vmem:[#allocation4 + $0x30] sm:$0xff]  }
  0x54   :  { %717 = vmatpush3.bf16.msra.mxu0 %v843_v2  ;;  %v856_v36 = vld [vmem:[#allocation4 + $0x38] sm:$0xff]   ;;  %v442_v37 = vld [vmem:[#allocation10 + $0x70] sm:$0xff]  ;;  %v87_v41 = vld [vmem:[#allocation9] sm:$0xff] }
  0x55   :  { %718 = vmatprep.subr.bf16.mxu0 %v844_v3  ;;  %807 = vmatpush3.bf16.msra.mxu1 %v804_v12  ;;  %v443_v38 = vld [vmem:[#allocation10 + $0x78] sm:$0xff]  ;;  %v88_v42 = vld [vmem:[#allocation9 + $0x8] sm:$0xff]  ;;  %v89_v43 = vld [vmem:[#allocation9 + $0x10] sm:$0xff]  ;;  %v104_v44 = vmul.f32 %v1083_v40, %v87_v41 }
  0x56   :  { %809 = vmatprep.subr.bf16.mxu1 %v808_v16  ;;  %v828_v39 = vpack.c.bf16 %v443_v38, %v442_v37  ;;  %v105_v46 = vmul.f32 %v1083_v40, %v88_v42  ;;  %v106_v47 = vmul.f32 %v1083_v40, %v89_v43  ;;  %v90_v49 = vld [vmem:[#allocation9 + $0x18] sm:$0xff]  ;;  %v91_v53 = vld [vmem:[#allocation9 + $0x20] sm:$0xff]  ;;  %v92_v57 = vld [vmem:[#allocation9 + $0x28] sm:$0xff] }
  0x57   :  { %v107_v54 = vmul.f32 %v1083_v40, %v90_v49  ;;  %v93_v58 = vld [vmem:[#allocation9 + $0x30] sm:$0xff]  ;;  %v108_v59 = vmul.f32 %v1083_v40, %v91_v53  ;;  %v109_v62 = vmul.f32 %v1083_v40, %v92_v57  ;;  %v94_v1 = vld [vmem:[#allocation9 + $0x38] sm:$0xff]  ;;  %v96_v9 = vld [vmem:[#allocation9 + $0x48] sm:$0xff] }
  0x58   :  { %719 = vmatpush3.bf16.msra.mxu0 %v844_v3  ;;  %v110_v63 = vmul.f32 %v1083_v40, %v93_v58  ;;  %v97_v10 = vld [vmem:[#allocation9 + $0x50] sm:$0xff]  ;;  %v113_v14 = vmul.f32 %v1083_v40, %v96_v9  ;;  %v98_v17 = vld [vmem:[#allocation9 + $0x58] sm:$0xff]  ;;  %v99_v21 = vld [vmem:[#allocation9 + $0x60] sm:$0xff] }
  0x59   :  { %720 = vmatprep.subr.bf16.mxu0 %v845_v5  ;;  %811 = vmatpush3.bf16.msra.mxu1 %v808_v16  ;;  %v115_v22 = vmul.f32 %v1083_v40, %v98_v17  ;;  %v100_v25 = vld [vmem:[#allocation9 + $0x68] sm:$0xff]  ;;  %v101_v26 = vld [vmem:[#allocation9 + $0x70] sm:$0xff]  ;;  %v663_v42 = vld [vmem:[%s1124_s5] ss:$0 sm:$0xff]  ;;  %s983_s5 = smov [#allocation12]  }
  0x5a   :  { %813 = vmatprep.subr.bf16.mxu1 %v812_v20  ;;  %v117_v30 = vmul.f32 %v1083_v40, %v100_v25  ;;  %s633_s25 = sshll.u32 %s983_s5, 4  ;;  %s634_s25 = int_to_ptr.vmem [resolvable:$true] %s633_s25 }
  0x5b   :  { %s945_s26 = scalar_lea.vmem %s634_s25, 2048  ;;  %p950_p5 = scmp.lt.s32.totalorder %s634_s25, %s634_s25 }
  0x5c   :  { %721 = vmatpush3.bf16.msra.mxu0 %v845_v5  ;;  %v95_v5 = vld [vmem:[#allocation9 + $0x40] sm:$0xff]  ;;  %p946_p4 = scmp.ne.s32.totalorder %s634_s25, %s945_s26  ;;  %p951_p6 = scmp.lt.s32.totalorder %s945_s26, %s945_s26 }
  0x5d   :  { %722 = vmatprep.subr.bf16.mxu0 %v846_v6  ;;  %815 = vmatpush3.bf16.msra.mxu1 %v812_v20  ;;  %v112_v11 = vmul.f32 %v1083_v40, %v95_v5 }
  0x5e   :  { %817 = vmatprep.subr.bf16.mxu1 %v816_v23  ;;  %p952_p7 = por %p951_p6, %p950_p5 }
  0x60   :  { %723 = vmatpush3.bf16.msra.mxu0 %v846_v6  ;;  %v111_v6 = vmul.f32 %v1083_v40, %v94_v1  ;;  %p953_p8 = pnand %p952_p7, %p946_p4 }
  0x61   :  { %724 = vmatprep.subr.bf16.mxu0 %v847_v15  ;;  %819 = vmatpush3.bf16.msra.mxu1 %v816_v23 }
  0x62   :  { %821 = vmatprep.subr.bf16.mxu1 %v820_v28 }
  0x64   :  { %725 = vmatpush3.bf16.msra.mxu0 %v847_v15  ;;  %v114_v15 = vmul.f32 %v1083_v40, %v97_v10 }
  0x65   :  { %726 = vmatprep.subr.bf16.mxu0 %v848_v19  ;;  %823 = vmatpush3.bf16.msra.mxu1 %v820_v28 }
  0x66   :  { %825 = vmatprep.subr.bf16.mxu1 %v824_v31 }
  0x68   :  { %727 = vmatpush3.bf16.msra.mxu0 %v848_v19 }
  0x69   :  { %827 = vmatpush3.bf16.msra.mxu1 %v824_v31  ;;  %v118_v31 = vmul.f32 %v1083_v40, %v101_v26 }
  0x6a   :  { %829 = vmatprep.subr.bf16.mxu1 %v828_v39 }
  0x6b   :  { %729 = vmatmul.mubr.bf16.vlgmr.msra.gmra.mrb[0].mxu0 %v850_v24 }
  0x6c   :  { %732 = vmatprep.mubr.bf16.mxu0 %v851_v27  ;;  %v116_v27 = vmul.f32 %v1083_v40, %v99_v21 }
  0x6d   :  { %831 = vmatpush3.bf16.msra.mxu1 %v828_v39 }
  0x73   :  { %733 = vmatmul.mubr.bf16.gmra.mrb[4].mxu0 %v852_v32 }
  0x74   :  { %736 = vmatprep.mubr.bf16.mxu0 %v853_v33  ;;  %v102_v33 = vld [vmem:[#allocation9 + $0x78] sm:$0xff] }
  0x75   :  { %v119_v37 = vmul.f32 %v1083_v40, %v102_v33 }
  0x7b   :  { %737 = vmatmul.mubr.bf16.gmra.mrb[8].mxu0 %v854_v34 }
  0x7c   :  { %740 = vmatprep.mubr.bf16.mxu0 %v855_v35 }
  0x83   :  { %741 = vmatmul.mubr.bf16.gmra.mrb[12].mxu0 %v856_v36 }
 0x13e   :  { %v730_v45 = vpop.f32.mrb[0].mxu0 }
 0x13f   :  { %v314_v48 = vpop.f32.mrb[1].mxu0  ;;  %v379_v56 = vadd.f32 %v730_v45, %v106_v47 }
 0x140   :  { %v731_v50 = vpop.f32.mrb[2].mxu0  ;;  %v377_v51 = vadd.f32 %v314_v48, %v104_v44 }
 0x141   :  { %v317_v52 = vpop.f32.mrb[3].mxu0  ;;  %v380_v60 = vadd.f32 %v731_v50, %v107_v54 }
 0x142   :  { %v378_v55 = vadd.f32 %v317_v52, %v105_v46  ;;  %776 = vmatprep.mubr.f32.mxu1 %v377_v51 }
 0x144   :  { %777 = vmatmul.mubr.f32.vlgmr.msra.gmra.mrb[0].mxu1 %v378_v55 }
 0x145   :  { %779 = vmatprep.mubr.f32.mxu1 %v379_v56 }
 0x146   :  { %v734_v61 = vpop.f32.mrb[4].mxu0 }
 0x147   :  { %v330_v0 = vpop.f32.mrb[5].mxu0  ;;  %v383_v8 = vadd.f32 %v734_v61, %v110_v63 }
 0x148   :  { %v381_v2 = vadd.f32 %v330_v0, %v108_v59  ;;  %v735_v3 = vpop.f32.mrb[6].mxu0  ;;  %780 = vmatmul.mubr.f32.gmra.mrb[2].mxu1 %v380_v60 }
 0x149   :  { %v333_v4 = vpop.f32.mrb[7].mxu0  ;;  %v384_v12 = vadd.f32 %v735_v3, %v111_v6 }
 0x14a   :  { %v382_v7 = vadd.f32 %v333_v4, %v109_v62  ;;  %782 = vmatprep.mubr.f32.mxu1 %v381_v2 }
 0x14c   :  { %783 = vmatmul.mubr.f32.gmra.mrb[4].mxu1 %v382_v7 }
 0x14d   :  { %785 = vmatprep.mubr.f32.mxu1 %v383_v8 }
 0x14e   :  { %v738_v13 = vpop.f32.mrb[8].mxu0 }
 0x14f   :  { %v346_v16 = vpop.f32.mrb[9].mxu0  ;;  %v387_v24 = vadd.f32 %v738_v13, %v114_v15 }
 0x150   :  { %v385_v18 = vadd.f32 %v346_v16, %v112_v11  ;;  %v739_v19 = vpop.f32.mrb[10].mxu0  ;;  %786 = vmatmul.mubr.f32.gmra.mrb[6].mxu1 %v384_v12 }
 0x151   :  { %v349_v20 = vpop.f32.mrb[11].mxu0  ;;  %v388_v28 = vadd.f32 %v739_v19, %v115_v22 }
 0x152   :  { %v386_v23 = vadd.f32 %v349_v20, %v113_v14  ;;  %788 = vmatprep.mubr.f32.mxu1 %v385_v18 }
 0x154   :  { %789 = vmatmul.mubr.f32.gmra.mrb[8].mxu1 %v386_v23 }
 0x155   :  { %791 = vmatprep.mubr.f32.mxu1 %v387_v24 }
 0x156   :  { %v742_v29 = vpop.f32.mrb[12].mxu0 }
 0x157   :  { %v362_v32 = vpop.f32.mrb[13].mxu0  ;;  %v391_v39 = vadd.f32 %v742_v29, %v118_v31 }
 0x158   :  { %v389_v34 = vadd.f32 %v362_v32, %v116_v27  ;;  %v743_v35 = vpop.f32.mrb[14].mxu0  ;;  %792 = vmatmul.mubr.f32.gmra.mrb[10].mxu1 %v388_v28 }
 0x159   :  { %v365_v36 = vpop.f32.mrb[15].mxu0  ;;  %v392_v41 = vadd.f32 %v743_v35, %v119_v37 }
 0x15a   :  { %v390_v38 = vadd.f32 %v365_v36, %v117_v30  ;;  %794 = vmatprep.mubr.f32.mxu1 %v389_v34 }
 0x15c   :  { %795 = vmatmul.mubr.f32.gmra.mrb[12].mxu1 %v390_v38 }
 0x15d   :  { %797 = vmatprep.mubr.f32.mxu1 %v391_v39 }
 0x160   :  { %798 = vmatmul.mubr.f32.gmra.mrb[14].mxu1 %v392_v41 }
 0x217   :  { %v778_v43 = vpop.f32.mrb[0].mxu1 }
 0x218   :  { %v523_v44 = vadd.f32 %v778_v43, %v663_v42  ;;  %v517_v45 = vpop.f32.mrb[1].mxu1 }
 0x219   :  { %v518_v46 = vadd.f32 %v663_v42, %v517_v45 }
 0x21a   :  { %v597_v47 = vmax.f32 %v523_v44, 0.0 }
 0x21b   :  { %v596_v48 = vmax.f32 %v518_v46, 0.0  ;;  %v781_v49 = vpop.f32.mrb[2].mxu1 }
 0x21c   :  { %613 = vst [vmem:[#allocation12 + $0x8] sm:$0xff] %v597_v47  ;;  %v533_v40 = vadd.f32 %v781_v49, %v663_v42  ;;  %v527_v50 = vpop.f32.mrb[3].mxu1 }
 0x21d   :  { %612 = vst [vmem:[#allocation12] sm:$0xff] %v596_v48  ;;  %v528_v51 = vadd.f32 %v663_v42, %v527_v50 }
 0x21e   :  { %v599_v52 = vmax.f32 %v533_v40, 0.0 }
 0x21f   :  { %v598_v53 = vmax.f32 %v528_v51, 0.0  ;;  %v784_v54 = vpop.f32.mrb[4].mxu1 }
 0x220   :  { %615 = vst [vmem:[#allocation12 + $0x18] sm:$0xff] %v599_v52  ;;  %v543_v55 = vadd.f32 %v784_v54, %v663_v42  ;;  %v537_v56 = vpop.f32.mrb[5].mxu1 }
 0x221   :  { %614 = vst [vmem:[#allocation12 + $0x10] sm:$0xff] %v598_v53  ;;  %v538_v57 = vadd.f32 %v663_v42, %v537_v56 }
 0x222   :  { %v601_v58 = vmax.f32 %v543_v55, 0.0 }
 0x223   :  { %v600_v59 = vmax.f32 %v538_v57, 0.0  ;;  %v787_v60 = vpop.f32.mrb[6].mxu1 }
 0x224   :  { %617 = vst [vmem:[#allocation12 + $0x28] sm:$0xff] %v601_v58  ;;  %v553_v61 = vadd.f32 %v787_v60, %v663_v42  ;;  %v547_v62 = vpop.f32.mrb[7].mxu1 }
 0x225   :  { %616 = vst [vmem:[#allocation12 + $0x20] sm:$0xff] %v600_v59  ;;  %v548_v63 = vadd.f32 %v663_v42, %v547_v62 }
 0x226   :  { %v603_v0 = vmax.f32 %v553_v61, 0.0 }
 0x227   :  { %v602_v1 = vmax.f32 %v548_v63, 0.0  ;;  %v790_v2 = vpop.f32.mrb[8].mxu1 }
 0x228   :  { %619 = vst [vmem:[#allocation12 + $0x38] sm:$0xff] %v603_v0  ;;  %v563_v3 = vadd.f32 %v790_v2, %v663_v42  ;;  %v557_v4 = vpop.f32.mrb[9].mxu1 }
 0x229   :  { %618 = vst [vmem:[#allocation12 + $0x30] sm:$0xff] %v602_v1  ;;  %v558_v5 = vadd.f32 %v663_v42, %v557_v4 }
 0x22a   :  { %v605_v6 = vmax.f32 %v563_v3, 0.0 }
 0x22b   :  { %v604_v7 = vmax.f32 %v558_v5, 0.0  ;;  %v793_v8 = vpop.f32.mrb[10].mxu1 }
 0x22c   :  { %621 = vst [vmem:[#allocation12 + $0x48] sm:$0xff] %v605_v6  ;;  %v573_v9 = vadd.f32 %v793_v8, %v663_v42  ;;  %v567_v10 = vpop.f32.mrb[11].mxu1 }
 0x22d   :  { %620 = vst [vmem:[#allocation12 + $0x40] sm:$0xff] %v604_v7  ;;  %v568_v11 = vadd.f32 %v663_v42, %v567_v10 }
 0x22e   :  { %v607_v12 = vmax.f32 %v573_v9, 0.0 }
 0x22f   :  { %v606_v13 = vmax.f32 %v568_v11, 0.0  ;;  %v796_v14 = vpop.f32.mrb[12].mxu1 }
 0x230   :  { %623 = vst [vmem:[#allocation12 + $0x58] sm:$0xff] %v607_v12  ;;  %v583_v15 = vadd.f32 %v796_v14, %v663_v42  ;;  %v577_v16 = vpop.f32.mrb[13].mxu1 }
 0x231   :  { %622 = vst [vmem:[#allocation12 + $0x50] sm:$0xff] %v606_v13  ;;  %v578_v17 = vadd.f32 %v663_v42, %v577_v16 }
 0x232   :  { %v609_v18 = vmax.f32 %v583_v15, 0.0 }
 0x233   :  { %v608_v19 = vmax.f32 %v578_v17, 0.0  ;;  %v799_v20 = vpop.f32.mrb[14].mxu1 }
 0x234   :  { %625 = vst [vmem:[#allocation12 + $0x68] sm:$0xff] %v609_v18  ;;  %v593_v21 = vadd.f32 %v799_v20, %v663_v42  ;;  %v587_v22 = vpop.f32.mrb[15].mxu1 }
 0x235   :  { %624 = vst [vmem:[#allocation12 + $0x60] sm:$0xff] %v608_v19  ;;  %v588_v23 = vadd.f32 %v663_v42, %v587_v22 }
 0x236   :  { %v611_v24 = vmax.f32 %v593_v21, 0.0 }
 0x237   :  { %v610_v25 = vmax.f32 %v588_v23, 0.0 }
 0x238   :  { %627 = vst [vmem:[#allocation12 + $0x78] sm:$0xff] %v611_v24 }
 0x239   :  { %626 = vst [vmem:[#allocation12 + $0x70] sm:$0xff] %v610_v25 }
 0x23a   :  { %956 = shalt.err (!%p953_p8)
}
 0x23b   :  { %s957_s29 = scalar_lea.hbm %s1125_s6, 2048 }
 0x23c   :  { %p958_p9 = scmp.ne.s32.totalorder %s1125_s6, %s957_s29  ;;  %p961_p10 = scmp.lt.u32.totalorder %s957_s29, %s1125_s6 }
 0x23e   :  { %p963_p11 = pnand %p961_p10, %p958_p9 }
 0x240   :  { %966 = shalt.err (!%p963_p11)
}
 0x241   :  { %639 = dma.vmem_to_hbm [thread:$0]  %s634_s25, 2048, %s1125_s6, [#allocation6], %s980_s1, %s980_s1, %s981_s24  }
 0x242   :  { %973 = dma.done.wait [#allocation6], 2048  }
 0x243   :  { %974 = vsyncadd [#allocation6], 4294965248 }
 0x244   :  { %643 = vsyncpa [#allocation5], 1 }
 0x245   :  { %644 = vsyncpa [#allocation8], 1 }
 0x246   :  { %645 = vsyncpa [#allocation11], 1 }
 0x247   :  { %646 = vsyncpa [#allocation6], 1 }

</bundles_post_ra>
